<compile_context>
chip_gen: v5e
topology: v5e:2x2
jax: 0.10.0
libtpu: 0.0.40
codegen_flags: <defaults>
</compile_context>

<pallas_src>
import functools

import jax
import jax.numpy as jnp
from jax import lax
from jax.experimental import pallas as pl
from jax.experimental.pallas import tpu as pltpu

LANE = 128
DEFAULT_TM = 512


def _round_up(x, m):
    return (x + m - 1) // m * m


def _vmem_limit_bytes(*buffer_bytes):
    # Double-buffered pipeline blocks + margin; kept under v7x's 64 MiB physical VMEM.
    need = 2 * sum(int(b) for b in buffer_bytes) + (4 << 20)
    return int(min(max(need, 32 << 20), 56 << 20))


# ---------------------------------------------------------------------------
# Kernel 1: im2col matmul (bf16 inputs, f32 accumulation) + per-tile partial
#           BN statistics (sum, sum-of-squares) as grid-indexed outputs.
# ---------------------------------------------------------------------------
def _conv_stats_kernel(p_ref, w_ref, y_ref, psum_ref, pssq_ref, *, m_real, tm, need_mask):
    i = pl.program_id(0)

    y = jnp.dot(p_ref[...], w_ref[...], preferred_element_type=jnp.float32)
    y_ref[...] = y

    def write_stats(yv):
        psum_ref[...] = jnp.sum(yv, axis=0, keepdims=True)[None]
        pssq_ref[...] = jnp.sum(yv * yv, axis=0, keepdims=True)[None]

    if need_mask:
        last = pl.num_programs(0) - 1

        @pl.when(i != last)
        def _():
            write_stats(y)

        @pl.when(i == last)
        def _():
            # Only the final tile contains padded rows; mask them out of the stats.
            rows = i * tm + lax.broadcasted_iota(jnp.int32, (tm, 1), 0)
            write_stats(jnp.where(rows < m_real, y, 0.0))
    else:
        write_stats(y)


# ---------------------------------------------------------------------------
# Kernel 2: reduce partial stats -> BN affine transform + LeakyReLU.
# The tiny cross-tile reduce + rsqrt is recomputed per grid step (negligible vs.
# the TM x OC elementwise work) to avoid any inter-kernel XLA glue.
# ---------------------------------------------------------------------------
def _bn_lrelu_kernel(y_ref, psum_ref, pssq_ref, g_ref, b_ref, o_ref, *, inv_m, eps, slope):
    s = jnp.sum(psum_ref[...], axis=0)      # (1, OC_pad)
    q = jnp.sum(pssq_ref[...], axis=0)      # (1, OC_pad)
    mean = s * inv_m
    var = q * inv_m - mean * mean           # biased variance (BN training mode)
    inv_std = lax.rsqrt(var + eps)
    scale = g_ref[...] * inv_std
    shift = b_ref[...] - mean * scale
    z = y_ref[...] * scale + shift
    o_ref[...] = jnp.where(z >= 0.0, z, slope * z)


def conv3_forward(x, weight, bias, gamma, beta, *, stride, padding,
                  eps=1e-5, negative_slope=0.01, tile_m=DEFAULT_TM):
    """Conv2d -> BatchNorm2d(batch stats) -> LeakyReLU.  x is NCHW, returns NCHW."""
    del bias  # Cancels exactly through BatchNorm's mean subtraction.

    N, C, H, W = x.shape
    OC, _, KH, KW = weight.shape
    OH = (H + 2 * padding - KH) // stride + 1
    OW = (W + 2 * padding - KW) // stride + 1

    # ---- im2col from a lane-contiguous NHWC layout (no 5-D transpose) -------
    x_nhwc = jnp.transpose(x, (0, 2, 3, 1)).astype(jnp.bfloat16)       # [N,H,W,C]
    xp = jnp.pad(x_nhwc, ((0, 0), (padding, padding), (padding, padding), (0, 0)))
    cols = [xp[:, ki:ki + stride * OH:stride, kj:kj + stride * OW:stride, :]
            for ki in range(KH) for kj in range(KW)]
    patches = jnp.concatenate(cols, axis=-1).reshape(N * OH * OW, KH * KW * C)
    # weight OIHW -> [KH, KW, C, OC] -> [K, OC] to match the (KH, KW, C) K-order.
    w_mat = jnp.transpose(weight, (2, 3, 1, 0)).reshape(KH * KW * C, OC).astype(jnp.bfloat16)

    M, K = N * OH * OW, KH * KW * C
    TM = min(tile_m, _round_up(M, 8))
    M_pad = _round_up(M, TM)
    K_pad = _round_up(K, 16)          # bf16 sublane packing; full-dim block, no 128 pad
    OC_pad = _round_up(OC, LANE)      # lane-dense output (biggest single lever)
    n_tiles = M_pad // TM

    patches_p = jnp.zeros((M_pad, K_pad), jnp.bfloat16).at[:M, :K].set(patches)
    w_p = jnp.zeros((K_pad, OC_pad), jnp.bfloat16).at[:K, :OC].set(w_mat)
    gamma_p = jnp.zeros((1, OC_pad), jnp.float32).at[0, :OC].set(gamma.astype(jnp.float32))
    beta_p = jnp.zeros((1, OC_pad), jnp.float32).at[0, :OC].set(beta.astype(jnp.float32))

    # ---- Pallas kernel 1: conv matmul + per-tile BN stats --------------------
    k1_vmem = _vmem_limit_bytes(TM * K_pad * 2, K_pad * OC_pad * 2,
                                TM * OC_pad * 4, 2 * OC_pad * 4)
    y_pad, psum, pssq = pl.pallas_call(
        functools.partial(_conv_stats_kernel, m_real=M, tm=TM, need_mask=(M_pad != M)),
        out_shape=(
            jax.ShapeDtypeStruct((M_pad, OC_pad), jnp.float32),
            jax.ShapeDtypeStruct((n_tiles, 1, OC_pad), jnp.float32),
            jax.ShapeDtypeStruct((n_tiles, 1, OC_pad), jnp.float32),
        ),
        grid_spec=pltpu.PrefetchScalarGridSpec(
            num_scalar_prefetch=0,
            grid=(n_tiles,),
            in_specs=[
                pl.BlockSpec((TM, K_pad), lambda i: (i, 0)),
                pl.BlockSpec((K_pad, OC_pad), lambda i: (0, 0)),
            ],
            out_specs=[
                pl.BlockSpec((TM, OC_pad), lambda i: (i, 0)),
                pl.BlockSpec((1, 1, OC_pad), lambda i: (i, 0, 0)),
                pl.BlockSpec((1, 1, OC_pad), lambda i: (i, 0, 0)),
            ],
        ),
        compiler_params=pltpu.CompilerParams(
            dimension_semantics=("parallel",),
            vmem_limit_bytes=k1_vmem,
        ),
    )(patches_p, w_p)

    # ---- Pallas kernel 2: BN normalize + LeakyReLU (aliased onto y_pad) ------
    k2_vmem = _vmem_limit_bytes(2 * TM * OC_pad * 4, 2 * n_tiles * OC_pad * 4,
                                2 * OC_pad * 4)
    out_pad = pl.pallas_call(
        functools.partial(_bn_lrelu_kernel, inv_m=1.0 / M, eps=eps, slope=negative_slope),
        out_shape=jax.ShapeDtypeStruct((M_pad, OC_pad), jnp.float32),
        grid_spec=pltpu.PrefetchScalarGridSpec(
            num_scalar_prefetch=0,
            grid=(n_tiles,),
            in_specs=[
                pl.BlockSpec((TM, OC_pad), lambda i: (i, 0)),
                pl.BlockSpec((n_tiles, 1, OC_pad), lambda i: (0, 0, 0)),
                pl.BlockSpec((n_tiles, 1, OC_pad), lambda i: (0, 0, 0)),
                pl.BlockSpec((1, OC_pad), lambda i: (0, 0)),
                pl.BlockSpec((1, OC_pad), lambda i: (0, 0)),
            ],
            out_specs=pl.BlockSpec((TM, OC_pad), lambda i: (i, 0)),
        ),
        compiler_params=pltpu.CompilerParams(
            dimension_semantics=("parallel",),
            vmem_limit_bytes=k2_vmem,
        ),
        input_output_aliases={0: 0},
    )(y_pad, psum, pssq, gamma_p, beta_p)

    # [M, OC] -> [N, OH, OW, OC] -> NCHW
    return out_pad[:M, :OC].reshape(N, OH, OW, OC).transpose(0, 3, 1, 2)


# ---------------------------------------------------------------------------
# Pure-JAX reference (f32 conv, includes the bias to verify its cancellation).
# ---------------------------------------------------------------------------
def conv3_reference(x, weight, bias, gamma, beta, *, stride, padding,
                    eps=1e-5, negative_slope=0.01):
    y = lax.conv_general_dilated(
        x, weight, window_strides=(stride, stride),
        padding=((padding, padding), (padding, padding)),
        dimension_numbers=("NCHW", "OIHW", "NCHW"),
        precision=lax.Precision.HIGHEST)
    y = y + bias[None, :, None, None]
    mean = y.mean(axis=(0, 2, 3), keepdims=True)
    var = y.var(axis=(0, 2, 3), keepdims=True)   # biased, like BN training mode
    z = (y - mean) / jnp.sqrt(var + eps)
    z = z * gamma[None, :, None, None] + beta[None, :, None, None]
    return jnp.where(z >= 0.0, z, negative_slope * z)


if __name__ == "__main__":
    # Conv_3(in_channels=4, out_channels=8, kernel=3, stride=1, padding=1)
    N, C_in, C_out = 2, 4, 8
    H = W = 16
    kernel, stride, padding = 3, 1, 1

    key = jax.random.PRNGKey(0)
    k1, k2, k3, k4, k5 = jax.random.split(key, 5)
    x = jax.random.normal(k1, (N, C_in, H, W), jnp.float32)
    weight = jax.random.normal(k2, (C_out, C_in, kernel, kernel), jnp.float32) * 0.1
    bias = jax.random.normal(k3, (C_out,), jnp.float32) * 0.1
    gamma = 1.0 + 0.1 * jax.random.normal(k4, (C_out,), jnp.float32)
    beta = 0.1 * jax.random.normal(k5, (C_out,), jnp.float32)

    out = conv3_forward(x, weight, bias, gamma, beta, stride=stride, padding=padding)
    out = jax.block_until_ready(out)

    ref = conv3_reference(x, weight, bias, gamma, beta, stride=stride, padding=padding)
    assert out.shape == (N, C_out, H, W), out.shape
    # bf16 MXU inputs (f32 accumulation) -> slightly looser tolerance than pure f32.
    err = float(jnp.max(jnp.abs(out - ref)))
    assert jnp.allclose(out, ref, rtol=3e-2, atol=3e-2), err

    print("KERNEL_OK")
</pallas_src>

<mosaic_0001>
module attributes {stable_mosaic.version = 11 : i64} {
  func.func @_conv_stats_kernel(%arg0: i32, %arg1: memref<512x48xbf16, #tpu.memory_space<vmem>>, %arg2: memref<48x128xbf16, #tpu.memory_space<vmem>>, %arg3: memref<512x128xf32, #tpu.memory_space<vmem>>, %arg4: memref<1x1x128xf32, #tpu.memory_space<vmem>>, %arg5: memref<1x1x128xf32, #tpu.memory_space<vmem>>) attributes {dimension_semantics = [#tpu.dimension_semantics<parallel>], iteration_bounds = array<i64: 1>, scalar_prefetch = 0 : i64, scratch_operands = 0 : i64, tpu.core_type = #tpu.core_type<tc>, window_params = [{transform_indices = @transform_0, window_bounds = array<i64: 512, 48>}, {pipeline_mode = #tpu.pipeline_mode<synchronous>, transform_indices = @transform_1, window_bounds = array<i64: 48, 128>}, {transform_indices = @transform_2, window_bounds = array<i64: 512, 128>}, {transform_indices = @transform_3, window_bounds = array<i64: 1, 1, 128>}, {transform_indices = @transform_4, window_bounds = array<i64: 1, 1, 128>}]} {
    %c0 = arith.constant 0 : index
    %c0_0 = arith.constant 0 : index
    %0 = vector.load %arg1[%c0, %c0_0] : memref<512x48xbf16, #tpu.memory_space<vmem>>, vector<512x48xbf16>
    %c0_1 = arith.constant 0 : index
    %c0_2 = arith.constant 0 : index
    %1 = vector.load %arg2[%c0_1, %c0_2] : memref<48x128xbf16, #tpu.memory_space<vmem>>, vector<48x128xbf16>
    %cst = arith.constant dense<0.000000e+00> : vector<512x128xf32>
    %2 = tpu.matmul %0, %1, %cst {dimension_numbers = #tpu.dot_dimension_numbers<[1], [0], [0], [1], [0, 0, 1, 1], [], []>} : vector<512x48xbf16>, vector<48x128xbf16>, vector<512x128xf32> -> vector<512x128xf32>
    %c0_3 = arith.constant 0 : index
    %c0_4 = arith.constant 0 : index
    %3 = vector.load %arg3[%c0_3, %c0_4] : memref<512x128xf32, #tpu.memory_space<vmem>>, vector<512x128xf32>
    tpu.vector_store %arg3[%c0_3, %c0_4], %2 {strides = array<i32>} : memref<512x128xf32, #tpu.memory_space<vmem>>, vector<512x128xf32>,
    %cst_5 = arith.constant dense<0.000000e+00> : vector<128xf32>
    %4 = vector.multi_reduction <add>, %2, %cst_5 [0] : vector<512x128xf32> to vector<128xf32>
    %5 = vector.shape_cast %4 : vector<128xf32> to vector<1x128xf32>
    %6 = vector.shape_cast %5 : vector<1x128xf32> to vector<1x1x128xf32>
    %c0_6 = arith.constant 0 : index
    %c0_7 = arith.constant 0 : index
    %c0_8 = arith.constant 0 : index
    %7 = vector.load %arg4[%c0_6, %c0_7, %c0_8] : memref<1x1x128xf32, #tpu.memory_space<vmem>>, vector<1x1x128xf32>
    tpu.vector_store %arg4[%c0_6, %c0_7, %c0_8], %6 {strides = array<i32>} : memref<1x1x128xf32, #tpu.memory_space<vmem>>, vector<1x1x128xf32>,
    %8 = arith.mulf %2, %2 : vector<512x128xf32>
    %cst_9 = arith.constant dense<0.000000e+00> : vector<128xf32>
    %9 = vector.multi_reduction <add>, %8, %cst_9 [0] : vector<512x128xf32> to vector<128xf32>
    %10 = vector.shape_cast %9 : vector<128xf32> to vector<1x128xf32>
    %11 = vector.shape_cast %10 : vector<1x128xf32> to vector<1x1x128xf32>
    %c0_10 = arith.constant 0 : index
    %c0_11 = arith.constant 0 : index
    %c0_12 = arith.constant 0 : index
    %12 = vector.load %arg5[%c0_10, %c0_11, %c0_12] : memref<1x1x128xf32, #tpu.memory_space<vmem>>, vector<1x1x128xf32>
    tpu.vector_store %arg5[%c0_10, %c0_11, %c0_12], %11 {strides = array<i32>} : memref<1x1x128xf32, #tpu.memory_space<vmem>>, vector<1x1x128xf32>,
    return
  }
  func.func @transform_0(%arg0: i32) -> (i32, i32) {
    %c0_i32 = arith.constant 0 : i32
    %c0_i32_0 = arith.constant 0 : i32
    return %arg0, %c0_i32 : i32, i32
  }
  func.func @transform_1(%arg0: i32) -> (i32, i32) {
    %c0_i32 = arith.constant 0 : i32
    %c0_i32_0 = arith.constant 0 : i32
    %c0_i32_1 = arith.constant 0 : i32
    return %c0_i32, %c0_i32_0 : i32, i32
  }
  func.func @transform_2(%arg0: i32) -> (i32, i32) {
    %c0_i32 = arith.constant 0 : i32
    %c0_i32_0 = arith.constant 0 : i32
    return %arg0, %c0_i32 : i32, i32
  }
  func.func @transform_3(%arg0: i32) -> (i32, i32, i32) {
    %c0_i32 = arith.constant 0 : i32
    %c0_i32_0 = arith.constant 0 : i32
    %c0_i32_1 = arith.constant 0 : i32
    return %arg0, %c0_i32, %c0_i32_0 : i32, i32, i32
  }
  func.func @transform_4(%arg0: i32) -> (i32, i32, i32) {
    %c0_i32 = arith.constant 0 : i32
    %c0_i32_0 = arith.constant 0 : i32
    %c0_i32_1 = arith.constant 0 : i32
    return %arg0, %c0_i32, %c0_i32_0 : i32, i32, i32
  }
}

</mosaic_0001>

<bundles_post_ra>
// kernel: tpu_custom_call.1
= control target key start
LH: loop header
LB: loop body
LE: loop exit
PB: predicated region body
PF: predicated region fallthrough
CT: control target
= control target key end

     0   :  { %10 = vsyncpa [#allocation3], 0  ;;  %s1615_s0 = inlined_call_operand.vmem [shape: bf16[512,48], index: 0, kind: input, shape index: {}]   ;;  %s1616_s1 = inlined_call_operand.vmem [shape: bf16[48,128], index: 1, kind: input, shape index: {}]   ;;  %s1617_s2 = inlined_call_operand.hbm [shape: f32[512,128], index: 2, kind: output, shape index: {0}]   ;;  %s1618_s3 = inlined_call_operand.hbm [shape: f32[1,1,128], index: 3, kind: output, shape index: {1}]   ;;  %s1619_s4 = inlined_call_operand.hbm [shape: f32[1,1,128], index: 4, kind: output, shape index: {2}]  }
   0x1   :  { %v1054_v0 = vld [vmem:[%s1616_s1 + $0x10] sm:$0xff]  ;;  %v1053_v1 = vld [vmem:[%s1616_s1 + $0x8] sm:$0xff] }
   0x2   :  { %367 = vmatpush.bf16.msra.mxu0 %v1054_v0  ;;  %1055 = vmatpush.bf16.msra.mxu1 %v1054_v0 }
   0x3   :  { %11 = vsyncpa [#allocation5], 0  ;;  %1056 = vmatpush.bf16.msra.mxu2 %v1054_v0  ;;  %1057 = vmatpush.bf16.msra.mxu3 %v1054_v0  ;;  %v1052_v2 = vld [vmem:[%s1616_s1] sm:$0xff]  ;;  %vm265_vm0 = vcmask 392192   ;;  %v1021_v5 = vld [vmem:[%s1615_s0 + $0x8] sm:$0xff]  ;;  %s805_s7 = sshll.u32 %s1617_s2, 4  ;;  %s806_s7 = int_to_ptr.hbm [resolvable:$true] %s805_s7 }
   0x4   :  { %v1020_v3 = vld [vmem:[%s1615_s0] sm:$0xff]  ;;  %v1029_v6 = vld [vmem:[%s1615_s0 + $0x48] sm:$0xff]  ;;  %v1022_v8 = vld [vmem:[%s1615_s0 + $0x10] sm:$0xff]  ;;  %s1146_s2 = smov 128   ;;  %s1147_s8 = smov 8  }
   0x5   :  { %v1028_v4 = vld [vmem:[%s1615_s0 + $0x40] sm:$0xff]  ;;  %v1030_v9 = vld [vmem:[%s1615_s0 + $0x50] sm:$0xff]  ;;  %v1037_v10 = vld [vmem:[%s1615_s0 + $0x88] sm:$0xff]  ;;  %s1148_s9 = smov [#allocation4]   ;;  %s819_s13 = sshll.u32 %s1618_s3, 4  ;;  %s820_s13 = int_to_ptr.hbm [resolvable:$true] %s819_s13 }
   0x6   :  { %368 = vmatpush.bf16.msra.mxu0 %v1053_v1  ;;  %1058 = vmatpush.bf16.msra.mxu1 %v1053_v1  ;;  %v1036_v7 = vld [vmem:[%s1615_s0 + $0x80] sm:$0xff]  ;;  %v1023_v11 = vld [vmem:[%s1615_s0 + $0x18] sm:$0xff]  ;;  %v1038_v13 = vld [vmem:[%s1615_s0 + $0x90] sm:$0xff]  ;;  %s817_s10 = sshll.u32 %s1148_s9, 4  ;;  %s1149_s14 = smov [#allocation6]   ;;  %s818_s10 = int_to_ptr.vmem [resolvable:$true] %s817_s10 }
   0x7   :  { %1059 = vmatpush.bf16.msra.mxu2 %v1053_v1  ;;  %1060 = vmatpush.bf16.msra.mxu3 %v1053_v1  ;;  %v1031_v12 = vld [vmem:[%s1615_s0 + $0x58] sm:$0xff]  ;;  %v1044_v14 = vld [vmem:[%s1615_s0 + $0xc0] sm:$0xff]  ;;  %v1045_v18 = vld [vmem:[%s1615_s0 + $0xc8] sm:$0xff]  ;;  %s828_s15 = sshll.u32 %s1149_s14, 4  ;;  %s830_s18 = sshll.u32 %s1619_s4, 4  ;;  %s829_s15 = int_to_ptr.vmem [resolvable:$true] %s828_s15  ;;  %s831_s18 = int_to_ptr.hbm [resolvable:$true] %s830_s18 }
   0x8   :  { %v1024_v15 = vld [vmem:[%s1615_s0 + $0x20] sm:$0xff]  ;;  %v1039_v17 = vld [vmem:[%s1615_s0 + $0x98] sm:$0xff]  ;;  %v1025_v19 = vld [vmem:[%s1615_s0 + $0x28] sm:$0xff] }
   0x9   :  { %v1032_v16 = vld [vmem:[%s1615_s0 + $0x60] sm:$0xff]  ;;  %v1033_v20 = vld [vmem:[%s1615_s0 + $0x68] sm:$0xff]  ;;  %v1046_v22 = vld [vmem:[%s1615_s0 + $0xd0] sm:$0xff] }
   0xa   :  { %369 = vmatpush.bf16.msra.mxu0 %v1052_v2  ;;  %1061 = vmatpush.bf16.msra.mxu1 %v1052_v2  ;;  %v1040_v21 = vld [vmem:[%s1615_s0 + $0xa0] sm:$0xff]  ;;  %v1026_v23 = vld [vmem:[%s1615_s0 + $0x30] sm:$0xff]  ;;  %v1041_v25 = vld [vmem:[%s1615_s0 + $0xa8] sm:$0xff] }
   0xb   :  { %1062 = vmatpush.bf16.msra.mxu2 %v1052_v2  ;;  %1063 = vmatpush.bf16.msra.mxu3 %v1052_v2  ;;  %v1034_v24 = vld [vmem:[%s1615_s0 + $0x70] sm:$0xff]  ;;  %v1047_v26 = vld [vmem:[%s1615_s0 + $0xd8] sm:$0xff]  ;;  %v1048_v30 = vld [vmem:[%s1615_s0 + $0xe0] sm:$0xff] }
   0xc   :  { %v1027_v27 = vld [vmem:[%s1615_s0 + $0x38] sm:$0xff]  ;;  %v1042_v29 = vld [vmem:[%s1615_s0 + $0xb0] sm:$0xff]  ;;  %v1049_v34 = vld [vmem:[%s1615_s0 + $0xe8] sm:$0xff] }
   0xd   :  { %988 = vmatmul.msk.bf16.vlgmr.msra.gmra.mxu0 %vm265_vm0, %v1020_v3  ;;  %996 = vmatmul.msk.bf16.vlgmr.msra.gmra.mxu1 %vm265_vm0, %v1028_v4  ;;  %v1035_v28 = vld [vmem:[%s1615_s0 + $0x78] sm:$0xff]  ;;  %v1050_v46 = vld [vmem:[%s1615_s0 + $0xf0] sm:$0xff] }
   0xe   :  { %1004 = vmatmul.msk.bf16.vlgmr.msra.gmra.mxu2 %vm265_vm0, %v1036_v7  ;;  %1012 = vmatmul.msk.bf16.vlgmr.msra.gmra.mxu3 %vm265_vm0, %v1044_v14  ;;  %v1043_v33 = vld [vmem:[%s1615_s0 + $0xb8] sm:$0xff] }
   0xf   :  { %v1051_v59 = vld [vmem:[%s1615_s0 + $0xf8] sm:$0xff]  ;;  %s1145_s0 = smov [#allocation2]  }
  0x10   :  { %s803_s30 = sshll.u32 %s1145_s0, 4  ;;  %s804_s30 = int_to_ptr.vmem [resolvable:$true] %s803_s30 }
  0x1d   :  { %989 = vmatmul.msk.bf16.gmra.mxu0 %vm265_vm0, %v1021_v5  ;;  %997 = vmatmul.msk.bf16.gmra.mxu1 %vm265_vm0, %v1029_v6 }
  0x1e   :  { %1005 = vmatmul.msk.bf16.gmra.mxu2 %vm265_vm0, %v1037_v10  ;;  %1013 = vmatmul.msk.bf16.gmra.mxu3 %vm265_vm0, %v1045_v18 }
  0x2d   :  { %990 = vmatmul.msk.bf16.gmra.mxu0 %vm265_vm0, %v1022_v8  ;;  %998 = vmatmul.msk.bf16.gmra.mxu1 %vm265_vm0, %v1030_v9 }
  0x2e   :  { %1006 = vmatmul.msk.bf16.gmra.mxu2 %vm265_vm0, %v1038_v13  ;;  %1014 = vmatmul.msk.bf16.gmra.mxu3 %vm265_vm0, %v1046_v22 }
  0x3d   :  { %991 = vmatmul.msk.bf16.gmra.mxu0 %vm265_vm0, %v1023_v11  ;;  %999 = vmatmul.msk.bf16.gmra.mxu1 %vm265_vm0, %v1031_v12 }
  0x3e   :  { %1007 = vmatmul.msk.bf16.gmra.mxu2 %vm265_vm0, %v1039_v17  ;;  %1015 = vmatmul.msk.bf16.gmra.mxu3 %vm265_vm0, %v1047_v26 }
  0x4d   :  { %992 = vmatmul.msk.bf16.gmra.mxu0 %vm265_vm0, %v1024_v15  ;;  %1000 = vmatmul.msk.bf16.gmra.mxu1 %vm265_vm0, %v1032_v16 }
  0x4e   :  { %1008 = vmatmul.msk.bf16.gmra.mxu2 %vm265_vm0, %v1040_v21  ;;  %1016 = vmatmul.msk.bf16.gmra.mxu3 %vm265_vm0, %v1048_v30 }
  0x5d   :  { %993 = vmatmul.msk.bf16.gmra.mxu0 %vm265_vm0, %v1025_v19  ;;  %1001 = vmatmul.msk.bf16.gmra.mxu1 %vm265_vm0, %v1033_v20 }
  0x5e   :  { %1009 = vmatmul.msk.bf16.gmra.mxu2 %vm265_vm0, %v1041_v25  ;;  %1017 = vmatmul.msk.bf16.gmra.mxu3 %vm265_vm0, %v1049_v34 }
  0x6d   :  { %994 = vmatmul.msk.bf16.gmra.mxu0 %vm265_vm0, %v1026_v23  ;;  %1002 = vmatmul.msk.bf16.gmra.mxu1 %vm265_vm0, %v1034_v24 }
  0x6e   :  { %1010 = vmatmul.msk.bf16.gmra.mxu2 %vm265_vm0, %v1042_v29  ;;  %1018 = vmatmul.msk.bf16.gmra.mxu3 %vm265_vm0, %v1050_v46 }
  0x7d   :  { %995 = vmatmul.msk.bf16.gmra.mxu0 %vm265_vm0, %v1027_v27  ;;  %1003 = vmatmul.msk.bf16.gmra.mxu1 %vm265_vm0, %v1035_v28 }
  0x7e   :  { %1011 = vmatmul.msk.bf16.gmra.mxu2 %vm265_vm0, %v1043_v33  ;;  %1019 = vmatmul.msk.bf16.gmra.mxu3 %vm265_vm0, %v1051_v59 }
  0x8a   :  { %v371_v31 = vpop.f32.mrf.mxu0  ;;  %v1296_v32 = vpop.f32.mrf.mxu1 }
  0x8b   :  { %531 = vst [vmem:[#allocation2] sm:$0xff] %v371_v31  ;;  %v665_v37 = vmul.f32 %v371_v31, %v371_v31 }
  0x8c   :  { %547 = vst [vmem:[#allocation2 + $0x80] sm:$0xff] %v1296_v32 }
  0x91   :  { %v1319_v51 = vpop.f32.mrf.mxu2  ;;  %v1353_v5 = vpop.f32.mrf.mxu3 }
  0x92   :  { %v373_v35 = vpop.f32.mrf.mxu0  ;;  %v1307_v36 = vpop.f32.mrf.mxu1  ;;  %563 = vst [vmem:[#allocation2 + $0x100] sm:$0xff] %v1319_v51 }
  0x93   :  { %532 = vst [vmem:[#allocation2 + $0x8] sm:$0xff] %v373_v35  ;;  %v595_v38 = vadd.f32 %v373_v35, %v371_v31  ;;  %v666_v39 = vmul.f32 %v373_v35, %v373_v35 }
  0x94   :  { %548 = vst [vmem:[#allocation2 + $0x88] sm:$0xff] %v1307_v36 }
  0x95   :  { %v729_v40 = vadd.f32 %v666_v39, %v665_v37  ;;  %579 = vst [vmem:[#allocation2 + $0x180] sm:$0xff] %v1353_v5 }
  0x99   :  { %v1327_v57 = vpop.f32.mrf.mxu2  ;;  %v1362_v9 = vpop.f32.mrf.mxu3 }
  0x9a   :  { %v376_v41 = vpop.f32.mrf.mxu0  ;;  %v1310_v42 = vpop.f32.mrf.mxu1  ;;  %564 = vst [vmem:[#allocation2 + $0x108] sm:$0xff] %v1327_v57 }
  0x9b   :  { %533 = vst [vmem:[#allocation2 + $0x10] sm:$0xff] %v376_v41  ;;  %v596_v43 = vadd.f32 %v595_v38, %v376_v41  ;;  %v667_v44 = vmul.f32 %v376_v41, %v376_v41 }
  0x9c   :  { %549 = vst [vmem:[#allocation2 + $0x90] sm:$0xff] %v1310_v42 }
  0x9d   :  { %v730_v45 = vadd.f32 %v729_v40, %v667_v44  ;;  %580 = vst [vmem:[#allocation2 + $0x188] sm:$0xff] %v1362_v9 }
  0xa1   :  { %v1339_v62 = vpop.f32.mrf.mxu2  ;;  %v1371_v13 = vpop.f32.mrf.mxu3 }
  0xa2   :  { %v378_v47 = vpop.f32.mrf.mxu0  ;;  %v1317_v48 = vpop.f32.mrf.mxu1  ;;  %565 = vst [vmem:[#allocation2 + $0x110] sm:$0xff] %v1339_v62 }
  0xa3   :  { %534 = vst [vmem:[#allocation2 + $0x18] sm:$0xff] %v378_v47  ;;  %v597_v49 = vadd.f32 %v596_v43, %v378_v47  ;;  %v668_v50 = vmul.f32 %v378_v47, %v378_v47 }
  0xa4   :  { %550 = vst [vmem:[#allocation2 + $0x98] sm:$0xff] %v1317_v48 }
  0xa5   :  { %v731_v52 = vadd.f32 %v730_v45, %v668_v50  ;;  %581 = vst [vmem:[#allocation2 + $0x190] sm:$0xff] %v1371_v13 }
  0xa9   :  { %v1345_v1 = vpop.f32.mrf.mxu2  ;;  %v1380_v17 = vpop.f32.mrf.mxu3 }
  0xaa   :  { %v381_v53 = vpop.f32.mrf.mxu0  ;;  %v1323_v54 = vpop.f32.mrf.mxu1  ;;  %566 = vst [vmem:[#allocation2 + $0x118] sm:$0xff] %v1345_v1 }
  0xab   :  { %535 = vst [vmem:[#allocation2 + $0x20] sm:$0xff] %v381_v53  ;;  %v1325_v55 = vadd.f32 %v597_v49, %v381_v53  ;;  %v669_v56 = vmul.f32 %v381_v53, %v381_v53 }
  0xac   :  { %551 = vst [vmem:[#allocation2 + $0xa0] sm:$0xff] %v1323_v54 }
  0xad   :  { %v1330_v58 = vadd.f32 %v731_v52, %v669_v56  ;;  %582 = vst [vmem:[#allocation2 + $0x198] sm:$0xff] %v1380_v17 }
  0xb1   :  { %v1351_v4 = vpop.f32.mrf.mxu2  ;;  %v1389_v21 = vpop.f32.mrf.mxu3 }
  0xb2   :  { %v383_v60 = vpop.f32.mrf.mxu0  ;;  %v1337_v61 = vpop.f32.mrf.mxu1  ;;  %567 = vst [vmem:[#allocation2 + $0x120] sm:$0xff] %v1351_v4 }
  0xb3   :  { %536 = vst [vmem:[#allocation2 + $0x28] sm:$0xff] %v383_v60  ;;  %v670_v26 = vmul.f32 %v383_v60, %v383_v60  ;;  %v599_v27 = vadd.f32 %v1325_v55, %v383_v60 }
  0xb4   :  { %552 = vst [vmem:[#allocation2 + $0xa8] sm:$0xff] %v1337_v61 }
  0xb5   :  { %583 = vst [vmem:[#allocation2 + $0x1a0] sm:$0xff] %v1389_v21  ;;  %v733_v29 = vadd.f32 %v1330_v58, %v670_v26 }
  0xb9   :  { %v1360_v8 = vpop.f32.mrf.mxu2  ;;  %v1398_v25 = vpop.f32.mrf.mxu3 }
  0xba   :  { %v386_v63 = vpop.f32.mrf.mxu0  ;;  %v1343_v0 = vpop.f32.mrf.mxu1  ;;  %568 = vst [vmem:[#allocation2 + $0x128] sm:$0xff] %v1360_v8 }
  0xbb   :  { %537 = vst [vmem:[#allocation2 + $0x30] sm:$0xff] %v386_v63  ;;  %v671_v28 = vmul.f32 %v386_v63, %v386_v63  ;;  %v600_v30 = vadd.f32 %v599_v27, %v386_v63 }
  0xbc   :  { %553 = vst [vmem:[#allocation2 + $0xb0] sm:$0xff] %v1343_v0 }
  0xbd   :  { %584 = vst [vmem:[#allocation2 + $0x1a8] sm:$0xff] %v1398_v25  ;;  %v734_v35 = vadd.f32 %v733_v29, %v671_v28 }
  0xc1   :  { %v1369_v12 = vpop.f32.mrf.mxu2  ;;  %v1409_v40 = vpop.f32.mrf.mxu3 }
  0xc2   :  { %v388_v2 = vpop.f32.mrf.mxu0  ;;  %v1349_v3 = vpop.f32.mrf.mxu1  ;;  %569 = vst [vmem:[#allocation2 + $0x130] sm:$0xff] %v1369_v12 }
  0xc3   :  { %538 = vst [vmem:[#allocation2 + $0x38] sm:$0xff] %v388_v2  ;;  %v672_v31 = vmul.f32 %v388_v2, %v388_v2  ;;  %v601_v37 = vadd.f32 %v600_v30, %v388_v2 }
  0xc4   :  { %554 = vst [vmem:[#allocation2 + $0xb8] sm:$0xff] %v1349_v3 }
  0xc5   :  { %v735_v41 = vadd.f32 %v734_v35, %v672_v31  ;;  %585 = vst [vmem:[#allocation2 + $0x1b0] sm:$0xff] %v1409_v40 }
  0xc9   :  { %v1378_v16 = vpop.f32.mrf.mxu2  ;;  %v1418_v63 = vpop.f32.mrf.mxu3 }
  0xca   :  { %v391_v6 = vpop.f32.mrf.mxu0  ;;  %v1358_v7 = vpop.f32.mrf.mxu1  ;;  %570 = vst [vmem:[#allocation2 + $0x138] sm:$0xff] %v1378_v16 }
  0xcb   :  { %539 = vst [vmem:[#allocation2 + $0x40] sm:$0xff] %v391_v6  ;;  %v673_v38 = vmul.f32 %v391_v6, %v391_v6  ;;  %v602_v43 = vadd.f32 %v601_v37, %v391_v6 }
  0xcc   :  { %555 = vst [vmem:[#allocation2 + $0xc0] sm:$0xff] %v1358_v7 }
  0xcd   :  { %v736_v45 = vadd.f32 %v735_v41, %v673_v38  ;;  %586 = vst [vmem:[#allocation2 + $0x1b8] sm:$0xff] %v1418_v63  ;;  %v681_v41 = vmul.f32 %v1296_v32, %v1296_v32 }
  0xd1   :  { %v1387_v20 = vpop.f32.mrf.mxu2 }
  0xd2   :  { %v393_v10 = vpop.f32.mrf.mxu0  ;;  %v1367_v11 = vpop.f32.mrf.mxu1  ;;  %571 = vst [vmem:[#allocation2 + $0x140] sm:$0xff] %v1387_v20 }
  0xd3   :  { %540 = vst [vmem:[#allocation2 + $0x48] sm:$0xff] %v393_v10  ;;  %v674_v44 = vmul.f32 %v393_v10, %v393_v10  ;;  %v603_v46 = vadd.f32 %v602_v43, %v393_v10 }
  0xd4   :  { %556 = vst [vmem:[#allocation2 + $0xc8] sm:$0xff] %v1367_v11 }
  0xd5   :  { %v737_v49 = vadd.f32 %v736_v45, %v674_v44  ;;  %v682_v44 = vmul.f32 %v1307_v36, %v1307_v36 }
  0xd9   :  { %v1396_v24 = vpop.f32.mrf.mxu2 }
  0xda   :  { %v396_v14 = vpop.f32.mrf.mxu0  ;;  %v1376_v15 = vpop.f32.mrf.mxu1  ;;  %572 = vst [vmem:[#allocation2 + $0x148] sm:$0xff] %v1396_v24 }
  0xdb   :  { %541 = vst [vmem:[#allocation2 + $0x50] sm:$0xff] %v396_v14  ;;  %v675_v47 = vmul.f32 %v396_v14, %v396_v14  ;;  %v604_v50 = vadd.f32 %v603_v46, %v396_v14 }
  0xdc   :  { %557 = vst [vmem:[#allocation2 + $0xd0] sm:$0xff] %v1376_v15 }
  0xdd   :  { %v738_v56 = vadd.f32 %v737_v49, %v675_v47  ;;  %v683_v47 = vmul.f32 %v1310_v42, %v1310_v42 }
  0xe1   :  { %v1407_v39 = vpop.f32.mrf.mxu2 }
  0xe2   :  { %v398_v18 = vpop.f32.mrf.mxu0  ;;  %v1385_v19 = vpop.f32.mrf.mxu1  ;;  %573 = vst [vmem:[#allocation2 + $0x150] sm:$0xff] %v1407_v39 }
  0xe3   :  { %542 = vst [vmem:[#allocation2 + $0x58] sm:$0xff] %v398_v18  ;;  %v676_v52 = vmul.f32 %v398_v18, %v398_v18  ;;  %v605_v58 = vadd.f32 %v604_v50, %v398_v18 }
  0xe4   :  { %558 = vst [vmem:[#allocation2 + $0xd8] sm:$0xff] %v1385_v19 }
  0xe5   :  { %v739_v2 = vadd.f32 %v738_v56, %v676_v52 }
  0xe9   :  { %v1416_v60 = vpop.f32.mrf.mxu2 }
  0xea   :  { %v401_v22 = vpop.f32.mrf.mxu0  ;;  %v1394_v23 = vpop.f32.mrf.mxu1  ;;  %574 = vst [vmem:[#allocation2 + $0x158] sm:$0xff] %v1416_v60 }
  0xeb   :  { %543 = vst [vmem:[#allocation2 + $0x60] sm:$0xff] %v401_v22  ;;  %v677_v59 = vmul.f32 %v401_v22, %v401_v22  ;;  %v606_v6 = vadd.f32 %v605_v58, %v401_v22  ;;  %v1427_v22 = vpop.f32.mrf.mxu3 }
  0xec   :  { %559 = vst [vmem:[#allocation2 + $0xe0] sm:$0xff] %v1394_v23 }
  0xed   :  { %v740_v14 = vadd.f32 %v739_v2, %v677_v59  ;;  %587 = vst [vmem:[#allocation2 + $0x1c0] sm:$0xff] %v1427_v22 }
  0xf1   :  { %v1425_v38 = vpop.f32.mrf.mxu2 }
  0xf2   :  { %v403_v33 = vpop.f32.mrf.mxu0  ;;  %v1405_v34 = vpop.f32.mrf.mxu1  ;;  %575 = vst [vmem:[#allocation2 + $0x160] sm:$0xff] %v1425_v38 }
  0xf3   :  { %544 = vst [vmem:[#allocation2 + $0x68] sm:$0xff] %v403_v33  ;;  %v678_v10 = vmul.f32 %v403_v33, %v403_v33  ;;  %v607_v26 = vadd.f32 %v606_v6, %v403_v33  ;;  %v1446_v58 = vpop.f32.mrf.mxu3 }
  0xf4   :  { %560 = vst [vmem:[#allocation2 + $0xe8] sm:$0xff] %v1405_v34 }
  0xf5   :  { %v741_v28 = vadd.f32 %v740_v14, %v678_v10  ;;  %588 = vst [vmem:[#allocation2 + $0x1c8] sm:$0xff] %v1446_v58  ;;  %v687_v10 = vmul.f32 %v1343_v0, %v1343_v0 }
  0xf9   :  { %v1444_v56 = vpop.f32.mrf.mxu2 }
  0xfa   :  { %v406_v53 = vpop.f32.mrf.mxu0  ;;  %v1414_v55 = vpop.f32.mrf.mxu1  ;;  %576 = vst [vmem:[#allocation2 + $0x168] sm:$0xff] %v1444_v56 }
  0xfb   :  { %545 = vst [vmem:[#allocation2 + $0x70] sm:$0xff] %v406_v53  ;;  %v679_v27 = vmul.f32 %v406_v53, %v406_v53  ;;  %v608_v18 = vadd.f32 %v607_v26, %v406_v53 }
  0xfc   :  { %561 = vst [vmem:[#allocation2 + $0xf0] sm:$0xff] %v1414_v55 }
  0xfd   :  { %v742_v31 = vadd.f32 %v741_v28, %v679_v27  ;;  %v688_v27 = vmul.f32 %v1349_v3, %v1349_v3 }
 0x102   :  { %v408_v29 = vpop.f32.mrf.mxu0  ;;  %v1423_v30 = vpop.f32.mrf.mxu1 }
 0x103   :  { %546 = vst [vmem:[#allocation2 + $0x78] sm:$0xff] %v408_v29  ;;  %v609_v35 = vadd.f32 %v608_v18, %v408_v29  ;;  %v680_v37 = vmul.f32 %v408_v29, %v408_v29  ;;  %v1462_v18 = vpop.f32.mrf.mxu2  ;;  %v1464_v29 = vpop.f32.mrf.mxu3 }
 0x104   :  { %562 = vst [vmem:[#allocation2 + $0xf8] sm:$0xff] %v1423_v30 }
 0x105   :  { %v610_v33 = vadd.f32 %v609_v35, %v1296_v32  ;;  %v743_v43 = vadd.f32 %v742_v31, %v680_v37  ;;  %v684_v32 = vmul.f32 %v1317_v48, %v1317_v48  ;;  %577 = vst [vmem:[#allocation2 + $0x170] sm:$0xff] %v1462_v18 }
 0x106   :  { %589 = vst [vmem:[#allocation2 + $0x1d0] sm:$0xff] %v1464_v29 }
 0x107   :  { %v611_v45 = vadd.f32 %v610_v33, %v1307_v36  ;;  %v744_v46 = vadd.f32 %v743_v43, %v681_v41  ;;  %v685_v36 = vmul.f32 %v1323_v54, %v1323_v54  ;;  %v691_v41 = vmul.f32 %v1376_v15, %v1376_v15 }
 0x109   :  { %v612_v49 = vadd.f32 %v611_v45, %v1310_v42  ;;  %v745_v50 = vadd.f32 %v744_v46, %v682_v44  ;;  %v686_v42 = vmul.f32 %v1337_v61, %v1337_v61  ;;  %v692_v44 = vmul.f32 %v1385_v19, %v1385_v19 }
 0x10b   :  { %v613_v52 = vadd.f32 %v612_v49, %v1317_v48  ;;  %v746_v53 = vadd.f32 %v745_v50, %v683_v47  ;;  %v1480_v46 = vpop.f32.mrf.mxu2  ;;  %v1482_v47 = vpop.f32.mrf.mxu3  ;;  %v693_v49 = vmul.f32 %v1394_v23, %v1394_v23 }
 0x10c   :  { %578 = vst [vmem:[#allocation2 + $0x178] sm:$0xff] %v1480_v46 }
 0x10d   :  { %v614_v59 = vadd.f32 %v613_v52, %v1323_v54  ;;  %v747_v2 = vadd.f32 %v746_v53, %v684_v32  ;;  %590 = vst [vmem:[#allocation2 + $0x1d8] sm:$0xff] %v1482_v47 }
 0x10f   :  { %v615_v48 = vadd.f32 %v614_v59, %v1337_v61  ;;  %v748_v6 = vadd.f32 %v747_v2, %v685_v36  ;;  %v689_v61 = vmul.f32 %v1358_v7, %v1358_v7  ;;  %v695_v36 = vmul.f32 %v1414_v55, %v1414_v55 }
 0x111   :  { %v749_v14 = vadd.f32 %v748_v6, %v686_v42  ;;  %v616_v26 = vadd.f32 %v615_v48, %v1343_v0  ;;  %v690_v0 = vmul.f32 %v1367_v11, %v1367_v11  ;;  %v697_v48 = vmul.f32 %v1319_v51, %v1319_v51 }
 0x113   :  { %v617_v54 = vadd.f32 %v616_v26, %v1349_v3  ;;  %v750_v28 = vadd.f32 %v749_v14, %v687_v10  ;;  %v1498_v42 = vpop.f32.mrf.mxu3  ;;  %v698_v10 = vmul.f32 %v1327_v57, %v1327_v57  ;;  %v699_v26 = vmul.f32 %v1339_v62, %v1339_v62 }
 0x114   :  { %591 = vst [vmem:[#allocation2 + $0x1e0] sm:$0xff] %v1498_v42 }
 0x115   :  { %v618_v31 = vadd.f32 %v617_v54, %v1358_v7  ;;  %v751_v35 = vadd.f32 %v750_v28, %v688_v27  ;;  %v700_v54 = vmul.f32 %v1345_v1, %v1345_v1 }
 0x117   :  { %v619_v3 = vadd.f32 %v618_v31, %v1367_v11  ;;  %v752_v37 = vadd.f32 %v751_v35, %v689_v61 }
 0x119   :  { %v620_v33 = vadd.f32 %v619_v3, %v1376_v15  ;;  %v753_v43 = vadd.f32 %v752_v37, %v690_v0 }
 0x11b   :  { %v621_v7 = vadd.f32 %v620_v33, %v1385_v19  ;;  %v754_v45 = vadd.f32 %v753_v43, %v691_v41  ;;  %v694_v19 = vmul.f32 %v1405_v34, %v1405_v34  ;;  %v704_v33 = vmul.f32 %v1378_v16, %v1378_v16 }
 0x11d   :  { %v622_v11 = vadd.f32 %v621_v7, %v1394_v23  ;;  %v755_v50 = vadd.f32 %v754_v45, %v692_v44  ;;  %v696_v23 = vmul.f32 %v1423_v30, %v1423_v30 }
 0x11f   :  { %v756_v15 = vadd.f32 %v755_v50, %v693_v49  ;;  %v623_v32 = vadd.f32 %v622_v11, %v1405_v34  ;;  %v707_v49 = vmul.f32 %v1407_v39, %v1407_v39 }
 0x121   :  { %v757_v52 = vadd.f32 %v756_v15, %v694_v19  ;;  %v624_v53 = vadd.f32 %v623_v32, %v1414_v55  ;;  %v708_v32 = vmul.f32 %v1416_v60, %v1416_v60 }
 0x123   :  { %v758_v59 = vadd.f32 %v757_v52, %v695_v36  ;;  %v625_v2 = vadd.f32 %v624_v53, %v1423_v30  ;;  %v709_v36 = vmul.f32 %v1425_v38, %v1425_v38 }
 0x125   :  { %v626_v34 = vadd.f32 %v625_v2, %v1319_v51  ;;  %v759_v6 = vadd.f32 %v758_v59, %v696_v23  ;;  %v1513_v51 = vpop.f32.mrf.mxu3 }
 0x126   :  { %592 = vst [vmem:[#allocation2 + $0x1e8] sm:$0xff] %v1513_v51 }
 0x127   :  { %v627_v55 = vadd.f32 %v626_v34, %v1327_v57  ;;  %v760_v14 = vadd.f32 %v759_v6, %v697_v48  ;;  %v701_v57 = vmul.f32 %v1351_v4, %v1351_v4  ;;  %v711_v48 = vmul.f32 %v1462_v18, %v1462_v18 }
 0x129   :  { %v628_v30 = vadd.f32 %v627_v55, %v1339_v62  ;;  %v761_v27 = vadd.f32 %v760_v14, %v698_v10  ;;  %v702_v62 = vmul.f32 %v1360_v8, %v1360_v8  ;;  %v713_v10 = vmul.f32 %v1353_v5, %v1353_v5 }
 0x12b   :  { %v629_v28 = vadd.f32 %v628_v30, %v1345_v1  ;;  %v762_v61 = vadd.f32 %v761_v27, %v699_v26  ;;  %v703_v1 = vmul.f32 %v1369_v12, %v1369_v12 }
 0x12d   :  { %v630_v31 = vadd.f32 %v629_v28, %v1351_v4  ;;  %v763_v35 = vadd.f32 %v762_v61, %v700_v54  ;;  %v1528_v4 = vpop.f32.mrf.mxu3 }
 0x12e   :  { %593 = vst [vmem:[#allocation2 + $0x1f0] sm:$0xff] %v1528_v4 }
 0x12f   :  { %v631_v0 = vadd.f32 %v630_v31, %v1360_v8  ;;  %v764_v3 = vadd.f32 %v763_v35, %v701_v57  ;;  %v705_v8 = vmul.f32 %v1387_v20, %v1387_v20 }
 0x131   :  { %v765_v37 = vadd.f32 %v764_v3, %v702_v62  ;;  %v632_v41 = vadd.f32 %v631_v0, %v1369_v12  ;;  %v706_v12 = vmul.f32 %v1396_v24, %v1396_v24 }
 0x133   :  { %v633_v43 = vadd.f32 %v632_v41, %v1378_v16  ;;  %v766_v44 = vadd.f32 %v765_v37, %v703_v1 }
 0x135   :  { %v634_v7 = vadd.f32 %v633_v43, %v1387_v20  ;;  %v767_v45 = vadd.f32 %v766_v44, %v704_v33  ;;  %v1546_v52 = vpop.f32.mrf.mxu3 }
 0x136   :  { %594 = vst [vmem:[#allocation2 + $0x1f8] sm:$0xff] %v1546_v52 }
 0x137   :  { %v635_v16 = vadd.f32 %v634_v7, %v1396_v24  ;;  %v768_v11 = vadd.f32 %v767_v45, %v705_v8  ;;  %811 = dma.vmem_to_hbm [thread:$0]  %s804_s30, 8192, %s806_s7, [#allocation3], %s1146_s2, %s1146_s2, %s1147_s8   ;;  %v724_v45 = vmul.f32 %v1482_v47, %v1482_v47 }
 0x139   :  { %v636_v50 = vadd.f32 %v635_v16, %v1407_v39  ;;  %v769_v15 = vadd.f32 %v768_v11, %v706_v12  ;;  %v725_v11 = vmul.f32 %v1498_v42, %v1498_v42 }
 0x13b   :  { %v637_v20 = vadd.f32 %v636_v50, %v1416_v60  ;;  %v770_v19 = vadd.f32 %v769_v15, %v707_v49  ;;  %v710_v60 = vmul.f32 %v1444_v56, %v1444_v56  ;;  %v726_v50 = vmul.f32 %v1513_v51, %v1513_v51 }
 0x13d   :  { %v771_v24 = vadd.f32 %v770_v19, %v708_v32  ;;  %v638_v53 = vadd.f32 %v637_v20, %v1425_v38  ;;  %v712_v38 = vmul.f32 %v1480_v46, %v1480_v46  ;;  %v727_v20 = vmul.f32 %v1528_v4, %v1528_v4 }
 0x13e   :  { %v728_v19 = vmul.f32 %v1546_v52, %v1546_v52 }
 0x13f   :  { %v772_v39 = vadd.f32 %v771_v24, %v709_v36  ;;  %v639_v59 = vadd.f32 %v638_v53, %v1444_v56  ;;  %v714_v56 = vmul.f32 %v1362_v9, %v1362_v9 }
 0x141   :  { %v773_v2 = vadd.f32 %v772_v39, %v710_v60  ;;  %v640_v23 = vadd.f32 %v639_v59, %v1462_v18  ;;  %v715_v18 = vmul.f32 %v1371_v13, %v1371_v13 }
 0x143   :  { %v774_v34 = vadd.f32 %v773_v2, %v711_v48  ;;  %v641_v6 = vadd.f32 %v640_v23, %v1480_v46  ;;  %v716_v46 = vmul.f32 %v1380_v17, %v1380_v17 }
 0x145   :  { %v642_v55 = vadd.f32 %v641_v6, %v1353_v5  ;;  %v775_v14 = vadd.f32 %v774_v34, %v712_v38  ;;  %v717_v5 = vmul.f32 %v1389_v21, %v1389_v21 }
 0x147   :  { %v643_v26 = vadd.f32 %v642_v55, %v1362_v9  ;;  %v776_v30 = vadd.f32 %v775_v14, %v713_v10  ;;  %v718_v9 = vmul.f32 %v1398_v25, %v1398_v25 }
 0x149   :  { %v644_v27 = vadd.f32 %v643_v26, %v1371_v13  ;;  %v777_v54 = vadd.f32 %v776_v30, %v714_v56  ;;  %v719_v13 = vmul.f32 %v1409_v40, %v1409_v40 }
 0x14b   :  { %v645_v28 = vadd.f32 %v644_v27, %v1380_v17  ;;  %v778_v61 = vadd.f32 %v777_v54, %v715_v18  ;;  %v720_v17 = vmul.f32 %v1418_v63, %v1418_v63 }
 0x14d   :  { %v646_v57 = vadd.f32 %v645_v28, %v1389_v21  ;;  %v779_v31 = vadd.f32 %v778_v61, %v716_v46  ;;  %v721_v21 = vmul.f32 %v1427_v22, %v1427_v22 }
 0x14f   :  { %v647_v35 = vadd.f32 %v646_v57, %v1398_v25  ;;  %v780_v62 = vadd.f32 %v779_v31, %v717_v5  ;;  %v722_v25 = vmul.f32 %v1446_v58, %v1446_v58 }
 0x151   :  { %v781_v0 = vadd.f32 %v780_v62, %v718_v9  ;;  %v648_v3 = vadd.f32 %v647_v35, %v1409_v40  ;;  %v723_v40 = vmul.f32 %v1464_v29, %v1464_v29 }
 0x153   :  { %v649_v1 = vadd.f32 %v648_v3, %v1418_v63  ;;  %v782_v37 = vadd.f32 %v781_v0, %v719_v13 }
 0x155   :  { %v650_v41 = vadd.f32 %v649_v1, %v1427_v22  ;;  %v783_v33 = vadd.f32 %v782_v37, %v720_v17 }
 0x157   :  { %v651_v43 = vadd.f32 %v650_v41, %v1446_v58  ;;  %v784_v44 = vadd.f32 %v783_v33, %v721_v21 }
 0x159   :  { %v652_v8 = vadd.f32 %v651_v43, %v1464_v29  ;;  %v785_v7 = vadd.f32 %v784_v44, %v722_v25 }
 0x15b   :  { %v653_v63 = vadd.f32 %v652_v8, %v1482_v47  ;;  %v786_v12 = vadd.f32 %v785_v7, %v723_v40 }
 0x15d   :  { %v787_v22 = vadd.f32 %v786_v12, %v724_v45  ;;  %v654_v16 = vadd.f32 %v653_v63, %v1498_v42 }
 0x15f   :  { %v788_v58 = vadd.f32 %v787_v22, %v725_v11  ;;  %v655_v49 = vadd.f32 %v654_v16, %v1513_v51 }
 0x161   :  { %v789_v29 = vadd.f32 %v788_v58, %v726_v50  ;;  %v656_v15 = vadd.f32 %v655_v49, %v1528_v4 }
 0x163   :  { %v790_v47 = vadd.f32 %v789_v29, %v727_v20  ;;  %v657_v32 = vadd.f32 %v656_v15, %v1546_v52 }
 0x165   :  { %v658_v24 = vrot.slane %v657_v32, 4  ;;  %v791_v42 = vadd.f32 %v790_v47, %v728_v19 }
 0x167   :  { %v659_v53 = vadd.f32 %v658_v24, %v657_v32  ;;  %v792_v36 = vrot.slane %v791_v42, 4 }
 0x169   :  { %v660_v39 = vrot.slane %v659_v53, 2  ;;  %v793_v59 = vadd.f32 %v792_v36, %v791_v42 }
 0x16b   :  { %v661_v60 = vadd.f32 %v660_v39, %v659_v53  ;;  %v794_v51 = vrot.slane %v793_v59, 2 }
 0x16d   :  { %v662_v4 = vrot.slane %v661_v60, 1  ;;  %v795_v2 = vadd.f32 %v794_v51, %v793_v59 }
 0x16f   :  { %v663_v52 = vadd.f32 %v662_v4, %v661_v60  ;;  %v796_v23 = vrot.slane %v795_v2, 1 }
 0x171   :  { %664 = vst [vmem:[#allocation4] sm:$0x1] %v663_v52  ;;  %v797_v48 = vadd.f32 %v796_v23, %v795_v2 }
 0x172   :  { %822 = dma.vmem_to_hbm [thread:$0]  %s818_s10, 16, %s820_s13, [#allocation5]  }
 0x173   :  { %798 = vst [vmem:[#allocation6] sm:$0x1] %v797_v48 }
 0x174   :  { %833 = dma.vmem_to_hbm [thread:$0]  %s829_s15, 16, %s831_s18, [#allocation5]  }
 0x175   :  { %1141 = dma.done.wait [#allocation3], 8192  }
 0x176   :  { %1142 = vsyncadd [#allocation3], 4294959104 }
 0x177   :  { %1143 = dma.done.wait [#allocation5], 32  }
 0x178   :  { %1144 = vsyncadd [#allocation5], 4294967264 }
 0x179   :  { %846 = vsyncpa [#allocation3], 1 }
 0x17a   :  { %847 = vsyncpa [#allocation5], 1 }

</bundles_post_ra>
